<compile_context>
chip_gen: v7x
topology: tpu7x:2x2x1
jax: 0.10.0
libtpu: 0.0.40
codegen_flags: <defaults>
</compile_context>

<pallas_src>
import functools

import jax
import jax.numpy as jnp
from jax.experimental import pallas as pl
from jax.experimental.pallas import tpu as pltpu


def _pinn_mlp_kernel(num_layers, in_dim, xt_ref, *rest):
    # rest = (w0, b0, w1, b1, ..., w_{L-1}, b_{L-1}, out_ref)
    # Layout: activations are (features, TM); weights are (d_out, d_in);
    # biases are (d_out, 1) and broadcast over the lane (batch) axis.
    out_ref = rest[-1]
    wb = rest[:-1]

    xt = xt_ref[...]                                     # (in_dim, TM) f32

    # --- First layer: K == in_dim (3) is tiny, so use VPU broadcast FMAs
    #     instead of a mostly-idle MXU matmul.  Normalization is already
    #     folded into w0/b0 by the wrapper.
    w0 = wb[0][...]                                      # (d1, in_dim)
    b0 = wb[1][...]                                      # (d1, 1)
    h = w0[:, 0:1] * xt[0:1, :]                          # (d1, TM)
    for k in range(1, in_dim):
        h = h + w0[:, k : k + 1] * xt[k : k + 1, :]
    h = h + b0
    if num_layers > 1:
        h = jnp.tanh(h)

    # --- Remaining layers on the MXU: (d_out, d_in) @ (d_in, TM).
    for i in range(1, num_layers):
        w = wb[2 * i][...]                               # (d_out, d_in)
        b = wb[2 * i + 1][...]                           # (d_out, 1)
        h = jnp.dot(w, h, preferred_element_type=jnp.float32) + b
        if i < num_layers - 1:                           # Tanh on hidden layers only
            h = jnp.tanh(h)

    out_ref[...] = h.astype(out_ref.dtype)               # (out_dim, TM), lane-dense store


def pinn_forward_pallas(x, y, t, low_bound, up_bound, weights, biases, *, tm=512):
    """Pallas implementation of PINN_Net.forward.

    x, y, t: (N, 1) float32 columns.
    low_bound / up_bound: (3,) float32.
    weights[i]: (layer_mat[i+1], layer_mat[i]) float32  (nn.Linear layout, (out, in)).
    biases[i]:  (layer_mat[i+1],) float32.
    Returns (N, layer_mat[-1]) float32.
    """
    x = x.astype(jnp.float32)
    y = y.astype(jnp.float32)
    t = t.astype(jnp.float32)
    n = x.shape[0]
    in_dim = 3
    num_layers = len(weights)
    out_dim = weights[-1].shape[0]

    # Batch-in-lanes layout: (3, N) then lane-pad the batch to a multiple of tm.
    n_pad = max(tm, pl.cdiv(n, tm) * tm)
    Xt = jnp.concatenate([x.T, y.T, t.T], axis=0)                 # (3, N)
    Xt_pad = jnp.pad(Xt, ((0, 0), (0, n_pad - n)))                # (3, n_pad)

    low = low_bound.reshape(in_dim).astype(jnp.float32)
    up = up_bound.reshape(in_dim).astype(jnp.float32)
    scale = 1.0 / (up - low)

    # Fold zero-one normalization into the first layer:
    #   W0 @ ((x - low) * scale) + b0 == (W0 * scale) @ x + (b0 - (W0 * scale) @ low)
    w0_f = weights[0].astype(jnp.float32) * scale[None, :]         # (d1, 3)
    b0_f = biases[0].astype(jnp.float32).reshape(-1) - w0_f @ low  # (d1,)

    ws = [w0_f] + [w.astype(jnp.float32) for w in weights[1:]]
    bs = [b0_f] + [b.astype(jnp.float32).reshape(-1) for b in biases[1:]]

    # Whole-array specs for the small parameter tensors (same block every step).
    param_args, param_specs = [], []
    for w, b in zip(ws, bs):
        b2 = b.reshape(-1, 1)                                      # (d_out, 1)
        param_args += [w, b2]
        param_specs += [
            pl.BlockSpec(w.shape, lambda i: (0, 0)),
            pl.BlockSpec(b2.shape, lambda i: (0, 0)),
        ]

    grid = (n_pad // tm,)
    kernel = functools.partial(_pinn_mlp_kernel, num_layers, in_dim)

    out_t = pl.pallas_call(
        kernel,
        out_shape=jax.ShapeDtypeStruct((out_dim, n_pad), jnp.float32),
        grid_spec=pltpu.PrefetchScalarGridSpec(
            num_scalar_prefetch=0,
            grid=grid,
            in_specs=[
                pl.BlockSpec((in_dim, tm), lambda i: (0, i)),      # X^T tile
            ] + param_specs,
            out_specs=pl.BlockSpec((out_dim, tm), lambda i: (0, i)),
        ),
        compiler_params=pltpu.CompilerParams(
            dimension_semantics=("parallel",)),
    )(Xt_pad, *param_args)

    return out_t[:, :n].T                                          # (N, out_dim)


def pinn_forward_ref(x, y, t, low_bound, up_bound, weights, biases):
    """Pure-JAX reference matching PyTorch forward semantics."""
    X = jnp.concatenate([x, y, t], axis=1).astype(jnp.float32)
    h = (X - low_bound) / (up_bound - low_bound)
    for i, (w, b) in enumerate(zip(weights, biases)):
        h = h @ w.T + b                                            # nn.Linear: (out, in)
        if i < len(weights) - 1:
            h = jnp.tanh(h)
    return h


def init_params(key, layer_mat):
    """Deterministic init matching __init__ shapes.
    Weights stored in nn.Linear layout (out, in); xavier-normal-style weights,
    zero biases.  (The module's Initial_param name filter never matches
    'linearXX.weight', so this is synthetic-but-deterministic, not a checkpoint.)
    """
    weights, biases = [], []
    for i in range(len(layer_mat) - 1):
        fan_in, fan_out = layer_mat[i], layer_mat[i + 1]
        key, sub = jax.random.split(key)
        std = (2.0 / (fan_in + fan_out)) ** 0.5
        w = std * jax.random.normal(sub, (fan_out, fan_in), jnp.float32)
        b = jnp.zeros((fan_out,), jnp.float32)
        weights.append(w)
        biases.append(b)
    return weights, biases


if __name__ == "__main__":
    # net_type = 'u_v_p'  -> layer_mat[-1] == 3
    layer_mat = [3, 32, 32, 3]
    N = 8

    key = jax.random.PRNGKey(0)
    key, kx, ky, kt = jax.random.split(key, 4)
    x = jax.random.uniform(kx, (N, 1), jnp.float32, minval=-1.0, maxval=1.0)
    y = jax.random.uniform(ky, (N, 1), jnp.float32, minval=-1.0, maxval=1.0)
    t = jax.random.uniform(kt, (N, 1), jnp.float32, minval=0.0, maxval=1.0)

    low_bound = jnp.array([-1.0, -1.0, 0.0], jnp.float32)
    up_bound = jnp.array([1.0, 1.0, 1.0], jnp.float32)

    weights, biases = init_params(key, layer_mat)

    out = pinn_forward_pallas(x, y, t, low_bound, up_bound, weights, biases)
    out = jax.block_until_ready(out)

    ref = pinn_forward_ref(x, y, t, low_bound, up_bound, weights, biases)
    assert out.shape == (N, layer_mat[-1])
    assert jnp.allclose(out, ref, atol=1e-5, rtol=1e-4), "mismatch vs reference"

    # TODO(synk): the autograd-based loss helpers (data_mse_*, eqns_mse_*,
    # pred_PsiP_uvp) rely on torch.autograd.grad; differentiation of this
    # forward is left to jax.grad at the wrapper level, not re-implemented here.
    print("KERNEL_OK")
</pallas_src>

<mosaic_0001>
module attributes {stable_mosaic.version = 11 : i64} {
  func.func @_pinn_mlp_kernel(%arg0: i32, %arg1: memref<3x512xf32, #tpu.memory_space<vmem>>, %arg2: memref<32x3xf32, #tpu.memory_space<vmem>>, %arg3: memref<32x1xf32, #tpu.memory_space<vmem>>, %arg4: memref<32x32xf32, #tpu.memory_space<vmem>>, %arg5: memref<32x1xf32, #tpu.memory_space<vmem>>, %arg6: memref<3x32xf32, #tpu.memory_space<vmem>>, %arg7: memref<3x1xf32, #tpu.memory_space<vmem>>, %arg8: memref<3x512xf32, #tpu.memory_space<vmem>>) attributes {dimension_semantics = [#tpu.dimension_semantics<parallel>], iteration_bounds = array<i64: 1>, scalar_prefetch = 0 : i64, scratch_operands = 0 : i64, tpu.core_type = #tpu.core_type<tc>, window_params = [{transform_indices = @transform_0, window_bounds = array<i64: 3, 512>}, {pipeline_mode = #tpu.pipeline_mode<synchronous>, transform_indices = @transform_1, window_bounds = array<i64: 32, 3>}, {pipeline_mode = #tpu.pipeline_mode<synchronous>, transform_indices = @transform_2, window_bounds = array<i64: 32, 1>}, {pipeline_mode = #tpu.pipeline_mode<synchronous>, transform_indices = @transform_3, window_bounds = array<i64: 32, 32>}, {pipeline_mode = #tpu.pipeline_mode<synchronous>, transform_indices = @transform_4, window_bounds = array<i64: 32, 1>}, {pipeline_mode = #tpu.pipeline_mode<synchronous>, transform_indices = @transform_5, window_bounds = array<i64: 3, 32>}, {pipeline_mode = #tpu.pipeline_mode<synchronous>, transform_indices = @transform_6, window_bounds = array<i64: 3, 1>}, {transform_indices = @transform_7, window_bounds = array<i64: 3, 512>}]} {
    %c0 = arith.constant 0 : index
    %c0_0 = arith.constant 0 : index
    %0 = vector.load %arg1[%c0, %c0_0] : memref<3x512xf32, #tpu.memory_space<vmem>>, vector<3x512xf32>
    %c0_1 = arith.constant 0 : index
    %c0_2 = arith.constant 0 : index
    %1 = vector.load %arg2[%c0_1, %c0_2] : memref<32x3xf32, #tpu.memory_space<vmem>>, vector<32x3xf32>
    %c0_3 = arith.constant 0 : index
    %c0_4 = arith.constant 0 : index
    %2 = vector.load %arg3[%c0_3, %c0_4] : memref<32x1xf32, #tpu.memory_space<vmem>>, vector<32x1xf32>
    %3 = vector.extract_strided_slice %1 {offsets = [0, 0], sizes = [32, 1], strides = [1, 1]} : vector<32x3xf32> to vector<32x1xf32>
    %4 = vector.extract_strided_slice %0 {offsets = [0, 0], sizes = [1, 512], strides = [1, 1]} : vector<3x512xf32> to vector<1x512xf32>
    %5 = vector.broadcast %3 : vector<32x1xf32> to vector<32x512xf32>
    %6 = vector.broadcast %4 : vector<1x512xf32> to vector<32x512xf32>
    %7 = arith.mulf %5, %6 : vector<32x512xf32>
    %8 = vector.extract_strided_slice %1 {offsets = [0, 1], sizes = [32, 1], strides = [1, 1]} : vector<32x3xf32> to vector<32x1xf32>
    %9 = vector.extract_strided_slice %0 {offsets = [1, 0], sizes = [1, 512], strides = [1, 1]} : vector<3x512xf32> to vector<1x512xf32>
    %10 = vector.broadcast %8 : vector<32x1xf32> to vector<32x512xf32>
    %11 = vector.broadcast %9 : vector<1x512xf32> to vector<32x512xf32>
    %12 = arith.mulf %10, %11 : vector<32x512xf32>
    %13 = arith.addf %7, %12 : vector<32x512xf32>
    %14 = vector.extract_strided_slice %1 {offsets = [0, 2], sizes = [32, 1], strides = [1, 1]} : vector<32x3xf32> to vector<32x1xf32>
    %15 = vector.extract_strided_slice %0 {offsets = [2, 0], sizes = [1, 512], strides = [1, 1]} : vector<3x512xf32> to vector<1x512xf32>
    %16 = vector.broadcast %14 : vector<32x1xf32> to vector<32x512xf32>
    %17 = vector.broadcast %15 : vector<1x512xf32> to vector<32x512xf32>
    %18 = arith.mulf %16, %17 : vector<32x512xf32>
    %19 = arith.addf %13, %18 : vector<32x512xf32>
    %20 = vector.broadcast %2 : vector<32x1xf32> to vector<32x512xf32>
    %21 = arith.addf %19, %20 : vector<32x512xf32>
    %22 = math.tanh %21 : vector<32x512xf32>
    %c0_5 = arith.constant 0 : index
    %c0_6 = arith.constant 0 : index
    %23 = vector.load %arg4[%c0_5, %c0_6] : memref<32x32xf32, #tpu.memory_space<vmem>>, vector<32x32xf32>
    %c0_7 = arith.constant 0 : index
    %c0_8 = arith.constant 0 : index
    %24 = vector.load %arg5[%c0_7, %c0_8] : memref<32x1xf32, #tpu.memory_space<vmem>>, vector<32x1xf32>
    %cst = arith.constant dense<0.000000e+00> : vector<32x512xf32>
    %25 = tpu.matmul %23, %22, %cst {dimension_numbers = #tpu.dot_dimension_numbers<[1], [0], [0], [1], [0, 0, 1, 1], [], []>} : vector<32x32xf32>, vector<32x512xf32>, vector<32x512xf32> -> vector<32x512xf32>
    %26 = vector.broadcast %24 : vector<32x1xf32> to vector<32x512xf32>
    %27 = arith.addf %25, %26 : vector<32x512xf32>
    %28 = math.tanh %27 : vector<32x512xf32>
    %c0_9 = arith.constant 0 : index
    %c0_10 = arith.constant 0 : index
    %29 = vector.load %arg6[%c0_9, %c0_10] : memref<3x32xf32, #tpu.memory_space<vmem>>, vector<3x32xf32>
    %c0_11 = arith.constant 0 : index
    %c0_12 = arith.constant 0 : index
    %30 = vector.load %arg7[%c0_11, %c0_12] : memref<3x1xf32, #tpu.memory_space<vmem>>, vector<3x1xf32>
    %cst_13 = arith.constant dense<0.000000e+00> : vector<3x512xf32>
    %31 = tpu.matmul %29, %28, %cst_13 {dimension_numbers = #tpu.dot_dimension_numbers<[1], [0], [0], [1], [0, 0, 1, 1], [], []>} : vector<3x32xf32>, vector<32x512xf32>, vector<3x512xf32> -> vector<3x512xf32>
    %32 = vector.broadcast %30 : vector<3x1xf32> to vector<3x512xf32>
    %33 = arith.addf %31, %32 : vector<3x512xf32>
    %c0_14 = arith.constant 0 : index
    %c0_15 = arith.constant 0 : index
    %34 = vector.load %arg8[%c0_14, %c0_15] : memref<3x512xf32, #tpu.memory_space<vmem>>, vector<3x512xf32>
    tpu.vector_store %arg8[%c0_14, %c0_15], %33 {strides = array<i32>} : memref<3x512xf32, #tpu.memory_space<vmem>>, vector<3x512xf32>,
    return
  }
  func.func @transform_0(%arg0: i32) -> (i32, i32) {
    %c0_i32 = arith.constant 0 : i32
    %c0_i32_0 = arith.constant 0 : i32
    return %c0_i32, %arg0 : i32, i32
  }
  func.func @transform_1(%arg0: i32) -> (i32, i32) {
    %c0_i32 = arith.constant 0 : i32
    %c0_i32_0 = arith.constant 0 : i32
    %c0_i32_1 = arith.constant 0 : i32
    return %c0_i32, %c0_i32_0 : i32, i32
  }
  func.func @transform_2(%arg0: i32) -> (i32, i32) {
    %c0_i32 = arith.constant 0 : i32
    %c0_i32_0 = arith.constant 0 : i32
    %c0_i32_1 = arith.constant 0 : i32
    return %c0_i32, %c0_i32_0 : i32, i32
  }
  func.func @transform_3(%arg0: i32) -> (i32, i32) {
    %c0_i32 = arith.constant 0 : i32
    %c0_i32_0 = arith.constant 0 : i32
    %c0_i32_1 = arith.constant 0 : i32
    return %c0_i32, %c0_i32_0 : i32, i32
  }
  func.func @transform_4(%arg0: i32) -> (i32, i32) {
    %c0_i32 = arith.constant 0 : i32
    %c0_i32_0 = arith.constant 0 : i32
    %c0_i32_1 = arith.constant 0 : i32
    return %c0_i32, %c0_i32_0 : i32, i32
  }
  func.func @transform_5(%arg0: i32) -> (i32, i32) {
    %c0_i32 = arith.constant 0 : i32
    %c0_i32_0 = arith.constant 0 : i32
    %c0_i32_1 = arith.constant 0 : i32
    return %c0_i32, %c0_i32_0 : i32, i32
  }
  func.func @transform_6(%arg0: i32) -> (i32, i32) {
    %c0_i32 = arith.constant 0 : i32
    %c0_i32_0 = arith.constant 0 : i32
    %c0_i32_1 = arith.constant 0 : i32
    return %c0_i32, %c0_i32_0 : i32, i32
  }
  func.func @transform_7(%arg0: i32) -> (i32, i32) {
    %c0_i32 = arith.constant 0 : i32
    %c0_i32_0 = arith.constant 0 : i32
    return %c0_i32, %arg0 : i32, i32
  }
}

</mosaic_0001>

<bundles_post_ra>
// kernel: tpu_custom_call.1
= control target key start
LH: loop header
LB: loop body
LE: loop exit
PB: predicated region body
PF: predicated region fallthrough
CT: control target
= control target key end

     0   :  { %v885_v1 = vmov 2   ;;  %v886_v2 = vmov 1   ;;  %s1097_s0 = inlined_call_operand.vmem [shape: f32[3,512], index: 0, kind: input, shape index: {}]   ;;  %s1098_s1 = inlined_call_operand.vmem [shape: f32[32,3], index: 1, kind: input, shape index: {}]   ;;  %s1099_s2 = inlined_call_operand.vmem [shape: f32[32,1], index: 2, kind: input, shape index: {}]   ;;  %s1100_s3 = inlined_call_operand.vmem [shape: f32[32,32], index: 3, kind: input, shape index: {}]   ;;  %s1101_s4 = inlined_call_operand.vmem [shape: f32[32,1], index: 4, kind: input, shape index: {}]   ;;  %s1102_s5 = inlined_call_operand.vmem [shape: f32[3,32], index: 5, kind: input, shape index: {}]   ;;  %s1103_s6 = inlined_call_operand.vmem [shape: f32[3,1], index: 6, kind: input, shape index: {}]   ;;  %s1104_s7 = inlined_call_operand.hbm [shape: f32[3,512], index: 7, kind: output, shape index: {}]  }
   0x1   :  { %v29_v0 = vld [vmem:[%s1098_s1] sm:$0xff]  ;;  %790 = vset.pattern.permute.xlu0 %v885_v1  ;;  %789 = vset.pattern.permute.xlu1 %v886_v2  ;;  %v31_v3 = vld [vmem:[%s1098_s1 + $0x10] sm:$0xff]  ;;  %v30_v4 = vld [vmem:[%s1098_s1 + $0x8] sm:$0xff] }
   0x2   :  { %196 = vperm.xlu0 %790, %v29_v0   ;;  %112 = vperm.xlu1 %789, %v29_v0  }
   0x6   :  { %204 = vperm.xlu0 %790, %v31_v3   ;;  %116 = vperm.xlu1 %789, %v30_v4  }
   0x7   :  { %12 = vsyncpa [#allocation3], 0  ;;  %v887_v5 = vmov 0   ;;  %v32_v6 = vld [vmem:[%s1098_s1 + $0x18] sm:$0xff]  ;;  %v34_v7 = vld [vmem:[%s1099_s2 + $0x8] sm:$0xff]  ;;  %v888_v16 = vmov 0.0   ;;  %v59_v17 = vlaneseq }
   0x8   :  { %v335_v8 = vld [vmem:[%s1101_s4] sm:$0xff]  ;;  %v337_v9 = vld [vmem:[%s1101_s4 + $0x10] sm:$0xff]  ;;  %v36_v13 = vld [vmem:[%s1099_s2 + $0x18] sm:$0xff]  ;;  %436 = vmatprep.mubr.f32.mxu0 %v888_v16  ;;  %525 = vmatprep.mubr.f32.mxu1 %v888_v16  ;;  %vm359_vm0 = vcmask 261120   ;;  %s889_s12 = smov [#allocation2]  }
   0x9   :  { %v567_v10 = vld [vmem:[%s1103_s6] sm:$0x7]  ;;  %v35_v12 = vld [vmem:[%s1099_s2 + $0x10] sm:$0xff]  ;;  %v336_v14 = vld [vmem:[%s1101_s4 + $0x8] sm:$0xff]  ;;  %v60_v18 = vshrl.u32 %v59_v17, 7  ;;  %s734_s13 = sshll.u32 %s889_s12, 4  ;;  %s735_s13 = int_to_ptr.vmem [resolvable:$true] %s734_s13 }
   0xa   :  { %794 = vset.pattern.permute.xlu0 %v887_v5  ;;  %791 = vset.pattern.permute.xlu1 %v885_v1  ;;  %v33_v11 = vld [vmem:[%s1099_s2] sm:$0xff]  ;;  %v338_v15 = vld [vmem:[%s1101_s4 + $0x18] sm:$0xff]  ;;  %v28_v26 = vld [vmem:[%s1097_s0 + $0x8] sm:$0x77]  ;;  %p866_p1 = scmp.lt.s32.totalorder %s735_s13, %s735_s13 }
   0xb   :  { %39 = vperm.xlu0 %794, %v29_v0   ;;  %200 = vperm.xlu1 %791, %v30_v4   ;;  %v129_v21 = vsub.s32 1, %v60_v18  ;;  %v133_v22 = vsub.s32 5, %v60_v18  ;;  %v27_v23 = vld [vmem:[%s1097_s0] sm:$0x77]  ;;  %v213_v27 = vsub.s32 2, %v60_v18  ;;  %v217_v28 = vsub.s32 6, %v60_v18 }
   0xc   :  { %v61_v29 = vsub.s32 0, %v60_v18  ;;  %v65_v31 = vsub.s32 4, %v60_v18 }
   0xd   :  { %v130_v30 = vrot.slane %v27_v23, %v129_v21  ;;  %v134_v32 = vrot.slane %v27_v23, %v133_v22  ;;  %v138_v33 = vrot.slane %v28_v26, %v129_v21  ;;  %v142_v34 = vrot.slane %v28_v26, %v133_v22 }
   0xe   :  { %v214_v35 = vrot.slane %v27_v23, %v213_v27  ;;  %v218_v38 = vrot.slane %v27_v23, %v217_v28  ;;  %v222_v39 = vrot.slane %v28_v26, %v213_v27  ;;  %v226_v40 = vrot.slane %v28_v26, %v217_v28 }
   0xf   :  { %44 = vperm.xlu0 %794, %v30_v4   ;;  %792 = vset.pattern.permute.xlu1 %v887_v5  ;;  %v62_v41 = vrot.slane %v27_v23, %v61_v29  ;;  %v977_v42 = vrot.slane %v130_v30, %v129_v21  ;;  %v66_v43 = vrot.slane %v27_v23, %v65_v31 }
  0x10   :  { %49 = vperm.xlu1 %792, %v31_v3   ;;  %v70_v44 = vrot.slane %v28_v26, %v61_v29  ;;  %v74_v45 = vrot.slane %v28_v26, %v65_v31  ;;  %v979_v46 = vrot.slane %v134_v32, %v129_v21  ;;  %v981_v47 = vrot.slane %v138_v33, %v129_v21 }
  0x11   :  { %v983_v48 = vrot.slane %v142_v34, %v129_v21  ;;  %v985_v49 = vrot.slane %v214_v35, %v213_v27  ;;  %v987_v51 = vrot.slane %v218_v38, %v213_v27  ;;  %v989_v52 = vrot.slane %v222_v39, %v213_v27 }
  0x12   :  { %v991_v53 = vrot.slane %v226_v40, %v213_v27  ;;  %v993_v54 = vrot.slane %v62_v41, %v61_v29  ;;  %v996_v57 = vrot.slane %v66_v43, %v61_v29  ;;  %v998_v58 = vrot.slane %v70_v44, %v61_v29 }
  0x13   :  { %54 = vperm.xlu0 %794, %v32_v6   ;;  %v1000_v59 = vrot.slane %v74_v45, %v61_v29 }
  0x14   :  { %793 = vset.pattern.permute.xlu1 %v886_v2 }
  0x15   :  { %120 = vperm.xlu1 %793, %v31_v3  }
  0x17   :  { %286 = vperm.xlu0 %794, %v34_v7  }
  0x19   :  { %124 = vperm.xlu1 %793, %v32_v6  }
  0x1b   :  { %341 = vperm.xlu0 %794, %v335_v8  }
  0x1d   :  { %795 = vset.pattern.permute.xlu1 %v885_v1 }
  0x1e   :  { %208 = vperm.xlu1 %795, %v32_v6  }
  0x1f   :  { %351 = vperm.xlu0 %794, %v337_v9  }
  0x22   :  { %796 = vset.pattern.permute.xlu1 %v887_v5 }
  0x23   :  { %570 = vperm.xlu0 %794, %v567_v10   ;;  %281 = vperm.xlu1 %796, %v33_v11  }
  0x27   :  { %291 = vperm.xlu1 %796, %v35_v12  }
  0x2b   :  { %296 = vperm.xlu1 %796, %v36_v13  }
  0x2f   :  { %346 = vperm.xlu1 %796, %v336_v14  }
  0x33   :  { %356 = vperm.xlu1 %796, %v338_v15  }
  0x81   :  { %v113_v19 = vpop.permute.xlu1 %112  ;;  %v197_v20 = vpop.permute.xlu0 %196 }
  0x82   :  { %v163_v56 = vmul.f32 %v977_v42, %v113_v19  ;;  %v164_v60 = vmul.f32 %v979_v46, %v113_v19  ;;  %v165_v61 = vmul.f32 %v981_v47, %v113_v19  ;;  %v166_v62 = vmul.f32 %v983_v48, %v113_v19 }
  0x83   :  { %v247_v63 = vmul.f32 %v985_v49, %v197_v20  ;;  %v248_v0 = vmul.f32 %v987_v51, %v197_v20  ;;  %v249_v1 = vmul.f32 %v989_v52, %v197_v20  ;;  %v250_v2 = vmul.f32 %v991_v53, %v197_v20 }
  0x85   :  { %v117_v24 = vpop.permute.xlu1 %116  ;;  %v205_v25 = vpop.permute.xlu0 %204 }
  0x86   :  { %v167_v3 = vmul.f32 %v977_v42, %v117_v24  ;;  %v168_v4 = vmul.f32 %v979_v46, %v117_v24  ;;  %v169_v5 = vmul.f32 %v981_v47, %v117_v24  ;;  %v170_v14 = vmul.f32 %v983_v48, %v117_v24 }
  0x87   :  { %v255_v15 = vmul.f32 %v985_v49, %v205_v25  ;;  %v256_v19 = vmul.f32 %v987_v51, %v205_v25  ;;  %v257_v20 = vmul.f32 %v989_v52, %v205_v25  ;;  %v1025_v21 = vmul.f32 %v991_v53, %v205_v25 }
  0x8a   :  { %v40_v36 = vpop.permute.xlu0 %39  ;;  %v201_v37 = vpop.permute.xlu1 %200 }
  0x8b   :  { %v95_v6 = vmul.f32 %v993_v54, %v40_v36  ;;  %v96_v8 = vmul.f32 %v996_v57, %v40_v36  ;;  %v97_v9 = vmul.f32 %v998_v58, %v40_v36  ;;  %v98_v10 = vmul.f32 %v1000_v59, %v40_v36 }
  0x8c   :  { %v251_v22 = vmul.f32 %v985_v49, %v201_v37  ;;  %v252_v26 = vmul.f32 %v987_v51, %v201_v37  ;;  %v253_v24 = vmul.f32 %v989_v52, %v201_v37  ;;  %v254_v33 = vmul.f32 %v991_v53, %v201_v37 }
  0x8d   :  { %v179_v23 = vadd.f32 %v163_v56, %v95_v6  ;;  %v180_v28 = vadd.f32 %v164_v60, %v96_v8  ;;  %v181_v29 = vadd.f32 %v165_v61, %v97_v9  ;;  %v182_v30 = vadd.f32 %v166_v62, %v98_v10 }
  0x8e   :  { %v45_v50 = vpop.permute.xlu0 %44 }
  0x8f   :  { %v50_v55 = vpop.permute.xlu1 %49  ;;  %v99_v7 = vmul.f32 %v993_v54, %v45_v50  ;;  %v100_v11 = vmul.f32 %v996_v57, %v45_v50  ;;  %v101_v17 = vmul.f32 %v998_v58, %v45_v50  ;;  %v102_v18 = vmul.f32 %v1000_v59, %v45_v50 }
  0x90   :  { %v103_v25 = vmul.f32 %v993_v54, %v50_v55  ;;  %v104_v36 = vmul.f32 %v996_v57, %v50_v55  ;;  %v105_v43 = vmul.f32 %v998_v58, %v50_v55  ;;  %v106_v44 = vmul.f32 %v1000_v59, %v50_v55 }
  0x91   :  { %v183_v27 = vadd.f32 %v167_v3, %v99_v7  ;;  %v184_v31 = vadd.f32 %v168_v4, %v100_v11  ;;  %v185_v34 = vadd.f32 %v169_v5, %v101_v17  ;;  %v186_v35 = vadd.f32 %v170_v14, %v102_v18 }
  0x92   :  { %v55_v12 = vpop.permute.xlu0 %54  ;;  %v263_v50 = vadd.f32 %v247_v63, %v179_v23  ;;  %v264_v56 = vadd.f32 %v248_v0, %v180_v28  ;;  %v265_v60 = vadd.f32 %v249_v1, %v181_v29  ;;  %v266_v61 = vadd.f32 %v250_v2, %v182_v30 }
  0x93   :  { %v267_v45 = vadd.f32 %v251_v22, %v183_v27  ;;  %v268_v37 = vadd.f32 %v252_v26, %v184_v31  ;;  %v269_v3 = vadd.f32 %v253_v24, %v185_v34  ;;  %v270_v4 = vadd.f32 %v254_v33, %v186_v35 }
  0x94   :  { %v121_v13 = vpop.permute.xlu1 %120  ;;  %v107_v11 = vmul.f32 %v993_v54, %v55_v12  ;;  %v108_v55 = vmul.f32 %v996_v57, %v55_v12  ;;  %v109_v63 = vmul.f32 %v998_v58, %v55_v12  ;;  %v110_v0 = vmul.f32 %v1000_v59, %v55_v12 }
  0x95   :  { %v171_v38 = vmul.f32 %v977_v42, %v121_v13  ;;  %v172_v39 = vmul.f32 %v979_v46, %v121_v13  ;;  %v173_v40 = vmul.f32 %v981_v47, %v121_v13  ;;  %v174_v62 = vmul.f32 %v983_v48, %v121_v13 }
  0x96   :  { %v287_v41 = vpop.permute.xlu0 %286 }
  0x97   :  { %v303_v5 = vadd.f32 %v287_v41, %v267_v45  ;;  %v187_v7 = vadd.f32 %v171_v38, %v103_v25  ;;  %v188_v8 = vadd.f32 %v172_v39, %v104_v36  ;;  %v189_v9 = vadd.f32 %v173_v40, %v105_v43 }
  0x98   :  { %v125_v32 = vpop.permute.xlu1 %124  ;;  %v304_v10 = vadd.f32 %v287_v41, %v268_v37  ;;  %v305_v14 = vadd.f32 %v287_v41, %v269_v3  ;;  %v306_v1 = vadd.f32 %v287_v41, %v270_v4  ;;  %v190_v17 = vadd.f32 %v174_v62, %v106_v44 }
  0x99   :  { %v175_v2 = vmul.f32 %v977_v42, %v125_v32  ;;  %v176_v13 = vmul.f32 %v979_v46, %v125_v32  ;;  %797 = vtanh.f32 %v303_v5  ;;  %v177_v18 = vmul.f32 %v981_v47, %v125_v32 }
  0x9a   :  { %v178_v22 = vmul.f32 %v983_v48, %v125_v32  ;;  %799 = vtanh.f32 %v304_v10  ;;  %v271_v23 = vadd.f32 %v255_v15, %v187_v7  ;;  %v272_v57 = vadd.f32 %v256_v19, %v188_v8 }
  0x9b   :  { %v273_v26 = vadd.f32 %v257_v20, %v189_v9  ;;  %801 = vtanh.f32 %v305_v14  ;;  %v191_v12 = vadd.f32 %v175_v2, %v107_v11  ;;  %v192_v42 = vadd.f32 %v176_v13, %v108_v55  ;;  %v331_v14 = vld [vmem:[%s1100_s3] sm:$0xff]  ;;  %v334_v2 = vld [vmem:[%s1100_s3 + $0x18] sm:$0xff]  ;;  %v342_v13 = vpop.permute.xlu0 %341 }
  0x9c   :  { %803 = vtanh.f32 %v306_v1  ;;  %v193_v48 = vadd.f32 %v177_v18, %v109_v63  ;;  %v274_v20 = vadd.f32 %v1025_v21, %v190_v17  ;;  %v194_v32 = vadd.f32 %v178_v22, %v110_v0  ;;  %v332_v0 = vld [vmem:[%s1100_s3 + $0x8] sm:$0xff]  ;;  %v333_v1 = vld [vmem:[%s1100_s3 + $0x10] sm:$0xff] }
  0x9d   :  { %v209_v6 = vpop.permute.xlu1 %208 }
  0x9e   :  { %v259_v46 = vmul.f32 %v985_v49, %v209_v6  ;;  %v260_v28 = vmul.f32 %v987_v51, %v209_v6  ;;  %v261_v47 = vmul.f32 %v989_v52, %v209_v6  ;;  %v262_v15 = vmul.f32 %v991_v53, %v209_v6 }
  0xa0   :  { %v275_v49 = vadd.f32 %v259_v46, %v191_v12  ;;  %v276_v51 = vadd.f32 %v260_v28, %v192_v42  ;;  %v277_v34 = vadd.f32 %v261_v47, %v193_v48  ;;  %v278_v35 = vadd.f32 %v262_v15, %v194_v32  ;;  %v352_v47 = vpop.permute.xlu0 %351 }
  0xa2   :  { %v282_v54 = vpop.permute.xlu1 %281 }
  0xa3   :  { %v299_v58 = vadd.f32 %v282_v54, %v263_v50  ;;  %v300_v24 = vadd.f32 %v282_v54, %v264_v56  ;;  %v301_v59 = vadd.f32 %v282_v54, %v265_v60  ;;  %v302_v27 = vadd.f32 %v282_v54, %v266_v61  ;;  %v798_v25 = vpop.eup %797 }
  0xa4   :  { %v800_v21 = vpop.eup %799 }
  0xa5   :  { %805 = vtanh.f32 %v299_v58  ;;  %v802_v40 = vpop.eup %801 }
  0xa6   :  { %807 = vtanh.f32 %v300_v24  ;;  %v292_v19 = vpop.permute.xlu1 %291  ;;  %v804_v41 = vpop.eup %803 }
  0xa7   :  { %809 = vtanh.f32 %v301_v59  ;;  %v307_v29 = vadd.f32 %v292_v19, %v271_v23  ;;  %v308_v30 = vadd.f32 %v292_v19, %v272_v57  ;;  %v309_v31 = vadd.f32 %v292_v19, %v273_v26 }
  0xa8   :  { %811 = vtanh.f32 %v302_v27  ;;  %v310_v33 = vadd.f32 %v292_v19, %v274_v20 }
  0xa9   :  { %813 = vtanh.f32 %v307_v29 }
  0xaa   :  { %815 = vtanh.f32 %v308_v30  ;;  %v297_v52 = vpop.permute.xlu1 %296 }
  0xab   :  { %817 = vtanh.f32 %v309_v31  ;;  %v311_v53 = vadd.f32 %v297_v52, %v275_v49  ;;  %v312_v36 = vadd.f32 %v297_v52, %v276_v51  ;;  %v313_v38 = vadd.f32 %v297_v52, %v277_v34 }
  0xac   :  { %819 = vtanh.f32 %v310_v33  ;;  %v314_v39 = vadd.f32 %v297_v52, %v278_v35 }
  0xad   :  { %821 = vtanh.f32 %v311_v53 }
  0xae   :  { %823 = vtanh.f32 %v312_v36  ;;  %v347_v58 = vpop.permute.xlu1 %346 }
  0xaf   :  { %v806_v43 = vpop.eup %805  ;;  %825 = vtanh.f32 %v313_v38 }
  0xb0   :  { %v808_v44 = vpop.eup %807  ;;  %827 = vtanh.f32 %v314_v39  ;;  %v754_v45 = vpack.c.bf16 %v798_v25, %v806_v43 }
  0xb1   :  { %v810_v50 = vpop.eup %809  ;;  %v752_v37 = vpack.c.bf16 %v800_v21, %v808_v44 }
  0xb2   :  { %v812_v56 = vpop.eup %811  ;;  %v762_v60 = vpack.c.bf16 %v802_v40, %v810_v50  ;;  %v357_v33 = vpop.permute.xlu1 %356 }
  0xb3   :  { %v814_v61 = vpop.eup %813  ;;  %753 = vmatprep.subr.bf16.mxu0 %v752_v37  ;;  %v760_v62 = vpack.c.bf16 %v804_v41, %v812_v56 }
  0xb4   :  { %v816_v3 = vpop.eup %815  ;;  %755 = vmatpush1.bf16.msra.mxu0 %v754_v45 }
  0xb5   :  { %v818_v4 = vpop.eup %817  ;;  %761 = vmatprep.subr.bf16.mxu1 %v760_v62 }
  0xb6   :  { %v820_v5 = vpop.eup %819  ;;  %763 = vmatpush1.bf16.msra.mxu1 %v762_v60 }
  0xb7   :  { %v822_v6 = vpop.eup %821 }
  0xb8   :  { %v824_v7 = vpop.eup %823  ;;  %v758_v8 = vpack.c.bf16 %v822_v6, %v814_v61 }
  0xb9   :  { %v826_v9 = vpop.eup %825  ;;  %v756_v10 = vpack.c.bf16 %v824_v7, %v816_v3 }
  0xba   :  { %v828_v11 = vpop.eup %827  ;;  %v766_v55 = vpack.c.bf16 %v826_v9, %v818_v4 }
  0xbb   :  { %757 = vmatprep.subr.bf16.mxu0 %v756_v10  ;;  %v764_v63 = vpack.c.bf16 %v828_v11, %v820_v5 }
  0xbc   :  { %759 = vmatpush1.bf16.msra.mxu0 %v758_v8 }
  0xbd   :  { %765 = vmatprep.subr.bf16.mxu1 %v764_v63 }
  0xbe   :  { %767 = vmatpush1.bf16.msra.mxu1 %v766_v55 }
  0xbf   :  { %742 = vmatmul.mubr.msk.f32.vlgmr.msra.gmra.mrb[0].mxu0 %vm359_vm0, %v331_v14 }
  0xc0   :  { %442 = vmatprep.mubr.f32.mxu0 %v888_v16 }
  0xc1   :  { %746 = vmatmul.mubr.msk.f32.vlgmr.msra.gmra.mrb[0].mxu1 %vm359_vm0, %v331_v14  ;;  %v566_v14 = vld [vmem:[%s1102_s5] sm:$0x7]  ;;  %s861_s5 = scalar_lea.vmem %s735_s13, 256 }
  0xc2   :  { %531 = vmatprep.mubr.f32.mxu1 %v888_v16  ;;  %p862_p0 = scmp.ne.s32.totalorder %s735_s13, %s861_s5  ;;  %p867_p2 = scmp.lt.s32.totalorder %s861_s5, %s861_s5 }
  0xc3   :  { %743 = vmatmul.mubr.msk.f32.gmra.mrb[2].mxu0 %vm359_vm0, %v332_v0 }
  0xc4   :  { %448 = vmatprep.mubr.f32.mxu0 %v888_v16  ;;  %p868_p3 = por %p867_p2, %p866_p1 }
  0xc5   :  { %747 = vmatmul.mubr.msk.f32.gmra.mrb[2].mxu1 %vm359_vm0, %v332_v0  ;;  %v571_v0 = vpop.permute.xlu0 %570 }
  0xc6   :  { %537 = vmatprep.mubr.f32.mxu1 %v888_v16  ;;  %p869_p4 = pnand %p868_p3, %p862_p0 }
  0xc7   :  { %744 = vmatmul.mubr.msk.f32.gmra.mrb[4].mxu0 %vm359_vm0, %v333_v1 }
  0xc8   :  { %454 = vmatprep.mubr.f32.mxu0 %v888_v16 }
  0xc9   :  { %748 = vmatmul.mubr.msk.f32.gmra.mrb[4].mxu1 %vm359_vm0, %v333_v1 }
  0xca   :  { %543 = vmatprep.mubr.f32.mxu1 %v888_v16 }
  0xcb   :  { %745 = vmatmul.mubr.msk.f32.gmra.mrb[6].mxu0 %vm359_vm0, %v334_v2 }
  0xcc   :  { %640 = vmatprep.mubr.f32.mxu0 %v888_v16 }
  0xcd   :  { %749 = vmatmul.mubr.msk.f32.gmra.mrb[6].mxu1 %vm359_vm0, %v334_v2 }
  0xce   :  { %711 = vmatprep.mubr.f32.mxu1 %v888_v16 }
 0x192   :  { %v438_v17 = vpop.f32.mrb[0].mxu0 }
 0x193   :  { %v439_v18 = vadd.f32 %v438_v17, %v342_v13  ;;  %v440_v22 = vpop.f32.mrb[1].mxu0 }
 0x194   :  { %v527_v54 = vpop.f32.mrb[0].mxu1  ;;  %v441_v23 = vadd.f32 %v440_v22, %v342_v13 }
 0x195   :  { %829 = vtanh.f32 %v439_v18  ;;  %v528_v57 = vadd.f32 %v527_v54, %v342_v13  ;;  %v529_v26 = vpop.f32.mrb[1].mxu1 }
 0x196   :  { %831 = vtanh.f32 %v441_v23  ;;  %v530_v24 = vadd.f32 %v529_v26, %v342_v13  ;;  %v444_v59 = vpop.f32.mrb[2].mxu0 }
 0x197   :  { %833 = vtanh.f32 %v528_v57  ;;  %v445_v12 = vadd.f32 %v444_v59, %v347_v58  ;;  %v446_v42 = vpop.f32.mrb[3].mxu0 }
 0x198   :  { %835 = vtanh.f32 %v530_v24  ;;  %v533_v27 = vpop.f32.mrb[2].mxu1  ;;  %v447_v46 = vadd.f32 %v446_v42, %v347_v58 }
 0x199   :  { %837 = vtanh.f32 %v445_v12  ;;  %v534_v16 = vadd.f32 %v533_v27, %v347_v58  ;;  %v535_v28 = vpop.f32.mrb[3].mxu1 }
 0x19a   :  { %839 = vtanh.f32 %v447_v46  ;;  %v536_v48 = vadd.f32 %v535_v28, %v347_v58  ;;  %v450_v15 = vpop.f32.mrb[4].mxu0 }
 0x19b   :  { %841 = vtanh.f32 %v534_v16  ;;  %v451_v19 = vadd.f32 %v450_v15, %v352_v47  ;;  %v452_v20 = vpop.f32.mrb[5].mxu0 }
 0x19c   :  { %843 = vtanh.f32 %v536_v48  ;;  %v539_v29 = vpop.f32.mrb[4].mxu1  ;;  %v453_v30 = vadd.f32 %v452_v20, %v352_v47 }
 0x19d   :  { %845 = vtanh.f32 %v451_v19  ;;  %v540_v31 = vadd.f32 %v539_v29, %v352_v47  ;;  %v541_v32 = vpop.f32.mrb[5].mxu1 }
 0x19e   :  { %847 = vtanh.f32 %v453_v30  ;;  %v542_v49 = vadd.f32 %v541_v32, %v352_v47  ;;  %v456_v51 = vpop.f32.mrb[6].mxu0 }
 0x19f   :  { %v830_v34 = vpop.eup %829  ;;  %849 = vtanh.f32 %v540_v31  ;;  %v457_v52 = vadd.f32 %v456_v51, %v357_v33  ;;  %v458_v35 = vpop.f32.mrb[7].mxu0 }
 0x1a0   :  { %v832_v25 = vpop.eup %831  ;;  %851 = vtanh.f32 %v542_v49  ;;  %v545_v53 = vpop.f32.mrb[6].mxu1  ;;  %v459_v36 = vadd.f32 %v458_v35, %v357_v33 }
 0x1a1   :  { %v834_v38 = vpop.eup %833  ;;  %853 = vtanh.f32 %v457_v52  ;;  %v546_v21 = vadd.f32 %v545_v53, %v357_v33  ;;  %v547_v39 = vpop.f32.mrb[7].mxu1 }
 0x1a2   :  { %v836_v40 = vpop.eup %835  ;;  %855 = vtanh.f32 %v459_v36  ;;  %v548_v41 = vadd.f32 %v547_v39, %v357_v33 }
 0x1a3   :  { %v838_v43 = vpop.eup %837  ;;  %857 = vtanh.f32 %v546_v21 }
 0x1a4   :  { %v840_v44 = vpop.eup %839  ;;  %859 = vtanh.f32 %v548_v41  ;;  %v770_v45 = vpack.c.bf16 %v838_v43, %v830_v34 }
 0x1a5   :  { %v842_v50 = vpop.eup %841  ;;  %v768_v37 = vpack.c.bf16 %v840_v44, %v832_v25 }
 0x1a6   :  { %v844_v56 = vpop.eup %843  ;;  %v778_v60 = vpack.c.bf16 %v842_v50, %v834_v38 }
 0x1a7   :  { %v846_v61 = vpop.eup %845  ;;  %769 = vmatprep.subr.bf16.mxu0 %v768_v37  ;;  %v776_v62 = vpack.c.bf16 %v844_v56, %v836_v40 }
 0x1a8   :  { %v848_v3 = vpop.eup %847  ;;  %771 = vmatpush1.bf16.msra.mxu0 %v770_v45 }
 0x1a9   :  { %v850_v4 = vpop.eup %849  ;;  %777 = vmatprep.subr.bf16.mxu1 %v776_v62 }
 0x1aa   :  { %v852_v5 = vpop.eup %851  ;;  %779 = vmatpush1.bf16.msra.mxu1 %v778_v60 }
 0x1ab   :  { %v854_v6 = vpop.eup %853 }
 0x1ac   :  { %v856_v7 = vpop.eup %855  ;;  %v774_v8 = vpack.c.bf16 %v854_v6, %v846_v61 }
 0x1ad   :  { %v858_v9 = vpop.eup %857  ;;  %v772_v10 = vpack.c.bf16 %v856_v7, %v848_v3 }
 0x1ae   :  { %v860_v11 = vpop.eup %859  ;;  %v782_v55 = vpack.c.bf16 %v858_v9, %v850_v4 }
 0x1af   :  { %773 = vmatprep.subr.bf16.mxu0 %v772_v10  ;;  %v780_v63 = vpack.c.bf16 %v860_v11, %v852_v5 }
 0x1b0   :  { %775 = vmatpush1.bf16.msra.mxu0 %v774_v8 }
 0x1b1   :  { %781 = vmatprep.subr.bf16.mxu1 %v780_v63 }
 0x1b2   :  { %783 = vmatpush1.bf16.msra.mxu1 %v782_v55 }
 0x1b3   :  { %750 = vmatmul.mubr.msk.f32.vlgmr.msra.gmra.mrb[8].mxu0 %vm359_vm0, %v566_v14 }
 0x1b5   :  { %751 = vmatmul.mubr.msk.f32.vlgmr.msra.gmra.mrb[8].mxu1 %vm359_vm0, %v566_v14 }
 0x286   :  { %v642_v1 = vpop.f32.mrb[8].mxu0 }
 0x287   :  { %v643_v2 = vadd.f32 %v642_v1, %v571_v0  ;;  %v644_v13 = vpop.f32.mrb[9].mxu0 }
 0x288   :  { %v713_v17 = vpop.f32.mrb[8].mxu1  ;;  %v645_v18 = vadd.f32 %v644_v13, %v571_v0 }
 0x289   :  { %v714_v22 = vadd.f32 %v713_v17, %v571_v0  ;;  %v715_v54 = vpop.f32.mrb[9].mxu1 }
 0x28a   :  { %v722_v23 = vcombine.low %v643_v2, %v645_v18  ;;  %v716_v57 = vadd.f32 %v715_v54, %v571_v0 }
 0x28c   :  { %726 = vst [vmem:[#allocation2] sm:$0x77] %v722_v23  ;;  %v723_v26 = vcombine.low %v714_v22, %v716_v57 }
 0x28e   :  { %727 = vst [vmem:[#allocation2 + $0x8] sm:$0x77] %v723_v26 }
 0x28f   :  { %872 = shalt.err (!%p869_p4)
}
 0x290   :  { %s873_s15 = scalar_lea.hbm %s1104_s7, 256 }
 0x291   :  { %p874_p5 = scmp.ne.s32.totalorder %s1104_s7, %s873_s15  ;;  %p877_p6 = scmp.lt.u32.totalorder %s873_s15, %s1104_s7 }
 0x293   :  { %p879_p7 = pnand %p877_p6, %p874_p5 }
 0x295   :  { %882 = shalt.err (!%p879_p7)
}
 0x296   :  { %737 = dma.vmem_to_hbm [thread:$0]  %s735_s13, 256, %s1104_s7, [#allocation3]  }
 0x297   :  { %883 = dma.done.wait [#allocation3], 256  }
 0x298   :  { %884 = vsyncadd [#allocation3], 4294967040 }
 0x299   :  { %741 = vsyncpa [#allocation3], 1 }

</bundles_post_ra>
